<compile_context>
chip_gen: v6e
topology: v6e:2x2x1
jax: 0.10.0
libtpu: 0.0.40
codegen_flags: <defaults>
</compile_context>

<pallas_src>
import math
from functools import partial

import jax
import jax.numpy as jnp
from jax import lax
from jax.experimental import pallas as pl
from jax.experimental.pallas import tpu as pltpu


def _round_up(x, m):
    return ((x + m - 1) // m) * m


# ---------------------------------------------------------------------------
# Fused kernel: [dense(H->H) + GELU + LayerNorm]  ->  decoder(H->V) + bias
# ---------------------------------------------------------------------------
def _head_kernel(x_ref, wd_ref, bd_ref, gamma_ref, beta_ref, wv_ref, bias_ref,
                 o_ref, t_ref, *, eps):
    # x_ref:  (tm, H) bf16     wd_ref: (H, H) bf16    bd/gamma/beta: (1, H) f32
    # wv_ref: (H, tn) bf16     bias_ref: (1, tn) f32
    # o_ref:  (tm, tn) out_dtype    t_ref (scratch): (tm, H) bf16

    # Transform for this row tile is computed once (first vocab step) and
    # reused for every vocab tile of the same row tile.
    @pl.when(pl.program_id(1) == 0)
    def _():
        # bf16 operands, f32 accumulation on the MXU.
        h = jnp.dot(x_ref[...], wd_ref[...],
                    preferred_element_type=jnp.float32) + bd_ref[...]
        # exact (erf-based) GELU, matching torch.nn.functional.gelu default
        h = 0.5 * h * (1.0 + lax.erf(h * (1.0 / math.sqrt(2.0))))
        # LayerNorm over last axis, f32 statistics (biased variance)
        mean = jnp.mean(h, axis=-1, keepdims=True)
        centered = h - mean
        var = jnp.mean(centered * centered, axis=-1, keepdims=True)
        hn = centered * lax.rsqrt(var + eps) * gamma_ref[...] + beta_ref[...]
        t_ref[...] = hn.astype(t_ref.dtype)

    # Decoder tile: (tm, H) @ (H, tn) + bias; bf16 in, f32 accumulate.
    acc = jnp.dot(t_ref[...], wv_ref[...], preferred_element_type=jnp.float32)
    o_ref[...] = (acc + bias_ref[...]).astype(o_ref.dtype)


# ---------------------------------------------------------------------------
# One-time parameter preparation (hoisted out of the per-call hot path):
# cast matmul weights to bf16, keep bias/LN vectors in f32 with 2-D layout.
# ---------------------------------------------------------------------------
def prepare_params(params):
    H = params["dense_w"].shape[0]
    V = params["decoder_w"].shape[1]
    return {
        "dense_w": params["dense_w"].astype(jnp.bfloat16),               # [H, H]
        "dense_b": params["dense_b"].reshape(1, H).astype(jnp.float32),
        "ln_gamma": params["ln_gamma"].reshape(1, H).astype(jnp.float32),
        "ln_beta": params["ln_beta"].reshape(1, H).astype(jnp.float32),
        "decoder_w": params["decoder_w"].astype(jnp.bfloat16),           # [H, V]
        "decoder_bias": params["decoder_bias"].reshape(1, V).astype(jnp.float32),
    }


# ---------------------------------------------------------------------------
# Tile choosers
# ---------------------------------------------------------------------------
def _choose_row_tile(M, tm_req):
    """Multiple of 8, never larger than the row extent (for M >= 8), and split
    so the 'parallel' row axis has >= 2 tiles (keeps both v7x TCs busy)."""
    if M < 8:
        return 8                                   # single (zero-padded) row tile
    tm = max(8, min((tm_req // 8) * 8, (M // 8) * 8))
    if tm >= M and M >= 16:                        # would collapse to 1 row tile
        tm = max(8, _round_up((M + 1) // 2, 8))
    return tm


def _choose_col_tile(V, tn_req):
    """Multiple of 128 (or the full vocab width for tiny V), never larger than
    the vocab extent; the last block may be partial (Pallas masks it)."""
    if V < 128:
        return V
    return max(128, min((tn_req // 128) * 128, (V // 128) * 128))


# ---------------------------------------------------------------------------
# Wrapper
# ---------------------------------------------------------------------------
def bert_lm_prediction_head(hidden_states, prepared, *, eps=1e-12,
                            tm=1024, tn=1024, out_dtype=jnp.float32):
    """hidden_states: [B, S, H] -> logits [B, S, V] (out_dtype).

    `prepared` must come from prepare_params() (bf16 weights, f32 vectors)."""
    B, S, H = hidden_states.shape
    V = prepared["decoder_w"].shape[1]
    M = B * S

    tm = _choose_row_tile(M, tm)
    tn = _choose_col_tile(V, tn)

    x = hidden_states.reshape(M, H)
    if x.dtype != jnp.bfloat16:
        x = x.astype(jnp.bfloat16)
    Mo = M
    if M < 8:                       # tiny-batch corner case only
        x = jnp.pad(x, ((0, 8 - M), (0, 0)))
        Mo = 8

    grid_rows = pl.cdiv(Mo, tm)
    grid_cols = pl.cdiv(V, tn)
    out_itemsize = jnp.dtype(out_dtype).itemsize

    # Explicit VMEM budget: double-buffered tiles + resident transform scratch,
    # capped at 56 MiB so the config keeps headroom on v7x's 64 MiB per TC.
    vmem_est = (2 * (tm * H * 2 + H * H * 2 + H * tn * 2 + tm * tn * out_itemsize
                     + 3 * H * 4 + tn * 4) + tm * H * 2)
    vmem_limit = int(min(max(vmem_est + (16 << 20), 32 << 20), 56 << 20))

    cost = pl.CostEstimate(
        flops=2 * M * H * (H + V),
        transcendentals=M * H,
        bytes_accessed=int(Mo * H * 2 + H * H * 2 + 3 * H * 4
                           + grid_rows * (H * V * 2 + V * 4)
                           + Mo * V * out_itemsize),
    )

    logits = pl.pallas_call(
        partial(_head_kernel, eps=eps),
        out_shape=jax.ShapeDtypeStruct((Mo, V), out_dtype),
        grid_spec=pltpu.PrefetchScalarGridSpec(
            num_scalar_prefetch=0,
            grid=(grid_rows, grid_cols),
            in_specs=[
                pl.BlockSpec((tm, H), lambda i, j: (i, 0)),   # x row tile
                pl.BlockSpec((H, H), lambda i, j: (0, 0)),    # dense weight (resident)
                pl.BlockSpec((1, H), lambda i, j: (0, 0)),    # dense bias
                pl.BlockSpec((1, H), lambda i, j: (0, 0)),    # LN gamma
                pl.BlockSpec((1, H), lambda i, j: (0, 0)),    # LN beta
                pl.BlockSpec((H, tn), lambda i, j: (0, j)),   # decoder weight tile
                pl.BlockSpec((1, tn), lambda i, j: (0, j)),   # decoder bias tile
            ],
            out_specs=pl.BlockSpec((tm, tn), lambda i, j: (i, j)),
            scratch_shapes=[pltpu.VMEM((tm, H), jnp.bfloat16)],
        ),
        compiler_params=pltpu.CompilerParams(
            dimension_semantics=("parallel", "arbitrary"),
            vmem_limit_bytes=vmem_limit),
        cost_estimate=cost,
    )(x, prepared["dense_w"], prepared["dense_b"], prepared["ln_gamma"],
      prepared["ln_beta"], prepared["decoder_w"], prepared["decoder_bias"])

    if Mo != M:
        logits = logits[:M]
    return logits.reshape(B, S, V)


# ---------------------------------------------------------------------------
# Pure-JAX reference (same bf16-operand / f32-accumulate dtype strategy)
# ---------------------------------------------------------------------------
def _reference(hidden_states, params, eps=1e-12):
    B, S, H = hidden_states.shape
    x = hidden_states.reshape(B * S, H).astype(jnp.bfloat16)
    h = jnp.dot(x, params["dense_w"].astype(jnp.bfloat16),
                preferred_element_type=jnp.float32) + params["dense_b"]
    h = 0.5 * h * (1.0 + lax.erf(h / jnp.sqrt(2.0)))
    mu = jnp.mean(h, axis=-1, keepdims=True)
    var = jnp.mean((h - mu) ** 2, axis=-1, keepdims=True)
    h = (h - mu) * lax.rsqrt(var + eps) * params["ln_gamma"] + params["ln_beta"]
    t = h.astype(jnp.bfloat16)
    logits = jnp.dot(t, params["decoder_w"].astype(jnp.bfloat16),
                     preferred_element_type=jnp.float32) + params["decoder_bias"]
    return logits.reshape(B, S, -1)


if __name__ == "__main__":
    key = jax.random.PRNGKey(0)
    # Small config; M (=B*S) and V deliberately NOT multiples of the tile
    # sizes so the un-padded / un-sliced partial-edge-block path is exercised.
    B, S, H, V = 2, 9, 64, 300

    k = jax.random.split(key, 6)
    hidden_states = jax.random.normal(k[0], (B, S, H), jnp.float32)
    params = {
        "dense_w": 0.05 * jax.random.normal(k[1], (H, H), jnp.float32),
        "dense_b": 0.01 * jax.random.normal(k[2], (H,), jnp.float32),
        "ln_gamma": jnp.ones((H,), jnp.float32),
        "ln_beta": jnp.zeros((H,), jnp.float32),
        "decoder_w": 0.05 * jax.random.normal(k[3], (H, V), jnp.float32),
        "decoder_bias": jnp.zeros((V,), jnp.float32),  # nn.Parameter(torch.zeros(V))
    }

    prepared = prepare_params(params)          # one-time cast, outside hot path
    ref = _reference(hidden_states, params)

    # 1) small explicit tiles -> multi-step (i, j) grid with partial edge blocks
    out = bert_lm_prediction_head(hidden_states, prepared, tm=8, tn=128)
    out = jax.block_until_ready(out)
    assert out.shape == (B, S, V)
    assert jnp.allclose(out, ref, atol=1e-2, rtol=1e-2), "mismatch (small tiles)"

    # 2) default (large) tiles -> exercises the tile-clamping / >=2-row-tile logic
    out2 = bert_lm_prediction_head(hidden_states, prepared)
    out2 = jax.block_until_ready(out2)
    assert out2.shape == (B, S, V)
    assert jnp.allclose(out2, ref, atol=1e-2, rtol=1e-2), "mismatch (default tiles)"

    print("KERNEL_OK")
</pallas_src>

<mosaic_0001>
module attributes {stable_mosaic.version = 11 : i64} {
  func.func @_head_kernel(%arg0: i32, %arg1: i32, %arg2: memref<8x64xbf16, #tpu.memory_space<vmem>>, %arg3: memref<64x64xbf16, #tpu.memory_space<vmem>>, %arg4: memref<1x64xf32, #tpu.memory_space<vmem>>, %arg5: memref<1x64xf32, #tpu.memory_space<vmem>>, %arg6: memref<1x64xf32, #tpu.memory_space<vmem>>, %arg7: memref<64x128xbf16, #tpu.memory_space<vmem>>, %arg8: memref<1x128xf32, #tpu.memory_space<vmem>>, %arg9: memref<8x128xf32, #tpu.memory_space<vmem>>, %arg10: memref<8x64xbf16, #tpu.memory_space<vmem>>) attributes {dimension_semantics = [#tpu.dimension_semantics<parallel>, #tpu.dimension_semantics<arbitrary>], iteration_bounds = array<i64: 3, 3>, scalar_prefetch = 0 : i64, scratch_operands = 1 : i64, tpu.core_type = #tpu.core_type<tc>, window_params = [{transform_indices = @transform_0, window_bounds = array<i64: 8, 64>}, {pipeline_mode = #tpu.pipeline_mode<synchronous>, transform_indices = @transform_1, window_bounds = array<i64: 64, 64>}, {pipeline_mode = #tpu.pipeline_mode<synchronous>, transform_indices = @transform_2, window_bounds = array<i64: 1, 64>}, {pipeline_mode = #tpu.pipeline_mode<synchronous>, transform_indices = @transform_3, window_bounds = array<i64: 1, 64>}, {pipeline_mode = #tpu.pipeline_mode<synchronous>, transform_indices = @transform_4, window_bounds = array<i64: 1, 64>}, {transform_indices = @transform_5, window_bounds = array<i64: 64, 128>}, {transform_indices = @transform_6, window_bounds = array<i64: 1, 128>}, {transform_indices = @transform_7, window_bounds = array<i64: 8, 128>}]} {
    %c0_i32 = arith.constant 0 : i32
    %0 = arith.cmpi eq, %arg1, %c0_i32 : i32
    %1 = arith.extui %0 : i1 to i32
    %c0_i32_0 = arith.constant 0 : i32
    %2 = arith.cmpi ne, %1, %c0_i32_0 : i32
    scf.if %2 {
      %c0_8 = arith.constant 0 : index
      %c0_9 = arith.constant 0 : index
      %10 = vector.load %arg2[%c0_8, %c0_9] : memref<8x64xbf16, #tpu.memory_space<vmem>>, vector<8x64xbf16>
      %c0_10 = arith.constant 0 : index
      %c0_11 = arith.constant 0 : index
      %11 = vector.load %arg3[%c0_10, %c0_11] : memref<64x64xbf16, #tpu.memory_space<vmem>>, vector<64x64xbf16>
      %cst_12 = arith.constant dense<0.000000e+00> : vector<8x64xf32>
      %12 = tpu.matmul %10, %11, %cst_12 {dimension_numbers = #tpu.dot_dimension_numbers<[1], [0], [0], [1], [0, 0, 1, 1], [], []>} : vector<8x64xbf16>, vector<64x64xbf16>, vector<8x64xf32> -> vector<8x64xf32>
      %c0_13 = arith.constant 0 : index
      %c0_14 = arith.constant 0 : index
      %13 = vector.load %arg4[%c0_13, %c0_14] : memref<1x64xf32, #tpu.memory_space<vmem>>, vector<1x64xf32>
      %14 = vector.broadcast %13 : vector<1x64xf32> to vector<8x64xf32>
      %15 = arith.addf %12, %14 : vector<8x64xf32>
      %cst_15 = arith.constant 5.000000e-01 : f32
      %16 = vector.broadcast %cst_15 : f32 to vector<8x64xf32>
      %17 = arith.mulf %16, %15 : vector<8x64xf32>
      %cst_16 = arith.constant 0.707106769 : f32
      %18 = vector.broadcast %cst_16 : f32 to vector<8x64xf32>
      %19 = arith.mulf %15, %18 : vector<8x64xf32>
      %20 = math.erf %19 : vector<8x64xf32>
      %cst_17 = arith.constant 1.000000e+00 : f32
      %21 = vector.broadcast %cst_17 : f32 to vector<8x64xf32>
      %22 = arith.addf %21, %20 : vector<8x64xf32>
      %23 = arith.mulf %17, %22 : vector<8x64xf32>
      %cst_18 = arith.constant dense<0.000000e+00> : vector<8xf32>
      %24 = vector.multi_reduction <add>, %23, %cst_18 [1] : vector<8x64xf32> to vector<8xf32>
      %25 = vector.shape_cast %24 : vector<8xf32> to vector<8x1xf32>
      %cst_19 = arith.constant 6.400000e+01 : f32
      %26 = vector.broadcast %cst_19 : f32 to vector<8x1xf32>
      %27 = arith.divf %25, %26 : vector<8x1xf32>
      %28 = vector.broadcast %27 : vector<8x1xf32> to vector<8x64xf32>
      %29 = arith.subf %23, %28 : vector<8x64xf32>
      %30 = arith.mulf %29, %29 : vector<8x64xf32>
      %cst_20 = arith.constant dense<0.000000e+00> : vector<8xf32>
      %31 = vector.multi_reduction <add>, %30, %cst_20 [1] : vector<8x64xf32> to vector<8xf32>
      %32 = vector.shape_cast %31 : vector<8xf32> to vector<8x1xf32>
      %cst_21 = arith.constant 6.400000e+01 : f32
      %33 = vector.broadcast %cst_21 : f32 to vector<8x1xf32>
      %34 = arith.divf %32, %33 : vector<8x1xf32>
      %cst_22 = arith.constant 9.99999996E-13 : f32
      %35 = vector.broadcast %cst_22 : f32 to vector<8x1xf32>
      %36 = arith.addf %34, %35 : vector<8x1xf32>
      %37 = math.rsqrt %36 : vector<8x1xf32>
      %38 = vector.broadcast %37 : vector<8x1xf32> to vector<8x64xf32>
      %39 = arith.mulf %29, %38 : vector<8x64xf32>
      %c0_23 = arith.constant 0 : index
      %c0_24 = arith.constant 0 : index
      %40 = vector.load %arg5[%c0_23, %c0_24] : memref<1x64xf32, #tpu.memory_space<vmem>>, vector<1x64xf32>
      %41 = vector.broadcast %40 : vector<1x64xf32> to vector<8x64xf32>
      %42 = arith.mulf %39, %41 : vector<8x64xf32>
      %c0_25 = arith.constant 0 : index
      %c0_26 = arith.constant 0 : index
      %43 = vector.load %arg6[%c0_25, %c0_26] : memref<1x64xf32, #tpu.memory_space<vmem>>, vector<1x64xf32>
      %44 = vector.broadcast %43 : vector<1x64xf32> to vector<8x64xf32>
      %45 = arith.addf %42, %44 : vector<8x64xf32>
      %46 = arith.truncf %45 : vector<8x64xf32> to vector<8x64xbf16>
      %c0_27 = arith.constant 0 : index
      %c0_28 = arith.constant 0 : index
      %47 = vector.load %arg10[%c0_27, %c0_28] : memref<8x64xbf16, #tpu.memory_space<vmem>>, vector<8x64xbf16>
      tpu.vector_store %arg10[%c0_27, %c0_28], %46 {strides = array<i32>} : memref<8x64xbf16, #tpu.memory_space<vmem>>, vector<8x64xbf16>,
    } else {
    }
    %c0 = arith.constant 0 : index
    %c0_1 = arith.constant 0 : index
    %3 = vector.load %arg10[%c0, %c0_1] : memref<8x64xbf16, #tpu.memory_space<vmem>>, vector<8x64xbf16>
    %c0_2 = arith.constant 0 : index
    %c0_3 = arith.constant 0 : index
    %4 = vector.load %arg7[%c0_2, %c0_3] : memref<64x128xbf16, #tpu.memory_space<vmem>>, vector<64x128xbf16>
    %cst = arith.constant dense<0.000000e+00> : vector<8x128xf32>
    %5 = tpu.matmul %3, %4, %cst {dimension_numbers = #tpu.dot_dimension_numbers<[1], [0], [0], [1], [0, 0, 1, 1], [], []>} : vector<8x64xbf16>, vector<64x128xbf16>, vector<8x128xf32> -> vector<8x128xf32>
    %c0_4 = arith.constant 0 : index
    %c0_5 = arith.constant 0 : index
    %6 = vector.load %arg8[%c0_4, %c0_5] : memref<1x128xf32, #tpu.memory_space<vmem>>, vector<1x128xf32>
    %7 = vector.broadcast %6 : vector<1x128xf32> to vector<8x128xf32>
    %8 = arith.addf %5, %7 : vector<8x128xf32>
    %c0_6 = arith.constant 0 : index
    %c0_7 = arith.constant 0 : index
    %9 = vector.load %arg9[%c0_6, %c0_7] : memref<8x128xf32, #tpu.memory_space<vmem>>, vector<8x128xf32>
    tpu.vector_store %arg9[%c0_6, %c0_7], %8 {strides = array<i32>} : memref<8x128xf32, #tpu.memory_space<vmem>>, vector<8x128xf32>,
    return
  }
  func.func @transform_0(%arg0: i32, %arg1: i32) -> (i32, i32) {
    %c0_i32 = arith.constant 0 : i32
    %c0_i32_0 = arith.constant 0 : i32
    return %arg0, %c0_i32 : i32, i32
  }
  func.func @transform_1(%arg0: i32, %arg1: i32) -> (i32, i32) {
    %c0_i32 = arith.constant 0 : i32
    %c0_i32_0 = arith.constant 0 : i32
    %c0_i32_1 = arith.constant 0 : i32
    return %c0_i32, %c0_i32_0 : i32, i32
  }
  func.func @transform_2(%arg0: i32, %arg1: i32) -> (i32, i32) {
    %c0_i32 = arith.constant 0 : i32
    %c0_i32_0 = arith.constant 0 : i32
    %c0_i32_1 = arith.constant 0 : i32
    return %c0_i32, %c0_i32_0 : i32, i32
  }
  func.func @transform_3(%arg0: i32, %arg1: i32) -> (i32, i32) {
    %c0_i32 = arith.constant 0 : i32
    %c0_i32_0 = arith.constant 0 : i32
    %c0_i32_1 = arith.constant 0 : i32
    return %c0_i32, %c0_i32_0 : i32, i32
  }
  func.func @transform_4(%arg0: i32, %arg1: i32) -> (i32, i32) {
    %c0_i32 = arith.constant 0 : i32
    %c0_i32_0 = arith.constant 0 : i32
    %c0_i32_1 = arith.constant 0 : i32
    return %c0_i32, %c0_i32_0 : i32, i32
  }
  func.func @transform_5(%arg0: i32, %arg1: i32) -> (i32, i32) {
    %c0_i32 = arith.constant 0 : i32
    %c0_i32_0 = arith.constant 0 : i32
    return %c0_i32, %arg1 : i32, i32
  }
  func.func @transform_6(%arg0: i32, %arg1: i32) -> (i32, i32) {
    %c0_i32 = arith.constant 0 : i32
    %c0_i32_0 = arith.constant 0 : i32
    return %c0_i32, %arg1 : i32, i32
  }
  func.func @transform_7(%arg0: i32, %arg1: i32) -> (i32, i32) {
    %c0_i32 = arith.constant 0 : i32
    return %arg0, %arg1 : i32, i32
  }
}

</mosaic_0001>

<bundles_post_ra>
// kernel: tpu_custom_call.1
= control target key start
LH: loop header
LB: loop body
LE: loop exit
PB: predicated region body
PF: predicated region fallthrough
CT: control target
= control target key end

     0   :  { %s1596_s0 = inlined_call_operand.hbm [shape: bf16[18,64], index: 0, kind: input, shape index: {}]   ;;  %s1597_s1 = inlined_call_operand.hbm [shape: bf16[64,64], index: 1, kind: input, shape index: {}]   ;;  %s1598_s2 = inlined_call_operand.vmem [shape: f32[1,64], index: 2, kind: input, shape index: {}]   ;;  %s1599_s3 = inlined_call_operand.vmem [shape: f32[1,64], index: 3, kind: input, shape index: {}]   ;;  %s1600_s4 = inlined_call_operand.vmem [shape: f32[1,64], index: 4, kind: input, shape index: {}]   ;;  %s1601_s5 = inlined_call_operand.hbm [shape: bf16[64,300], index: 5, kind: input, shape index: {}]   ;;  %s1602_s6 = inlined_call_operand.vmem [shape: f32[1,300], index: 6, kind: input, shape index: {}]   ;;  %s1603_s7 = inlined_call_operand.hbm [shape: f32[18,300], index: 7, kind: output, shape index: {}]  }
   0x1   :  { %1612 = sst [smem:[#allocation21_spill]] %s1596_s0 }
   0x2   :  { %1613 = sst [smem:[#allocation22_spill]] %s1597_s1 }
   0x3   :  { %1614 = sst [smem:[#allocation23_spill]] %s1598_s2 }
   0x4   :  { %1615 = sst [smem:[#allocation24_spill]] %s1599_s3 }
   0x5   :  { %1616 = sst [smem:[#allocation25_spill]] %s1600_s4 }
   0x6   :  { %1617 = sst [smem:[#allocation26_spill]] %s1601_s5 }
   0x7   :  { %1618 = sst [smem:[#allocation27_spill]] %s1602_s6 }
   0x8   :  { %1619 = sst [smem:[#allocation28_spill]] %s1603_s7 }
   0x9   :  { %12 = vsyncpa [#allocation4], 0 }
   0xa   :  { %14 = vsyncpa [#allocation4 + $0x1], 0 }
   0xb   :  { %15 = vsyncpa [#allocation7], 0 }
   0xc   :  { %16 = vsyncpa [#allocation5], 0 }
   0xd   :  { %18 = vsyncpa [#allocation5 + $0x1], 0  ;;  %s1239_s24 = smov 0   ;;  %s1241_s25 = smov 0  }
   0xe   :  { %s1243_s26 = smov 0   ;;  %s1245_s27 = smov 0  }
   0xf   :  { %s1247_s28 = smov 0   ;;  %s1249_s29 = smov 0  }
  0x10   :  { %s1251_s30 = smov 0   ;;  %s1253_s8 = smov 0  }
  0x11   :  { %s1255_s9 = smov 0   ;;  %s1257_s10 = smov 0  }
  0x12   :  { %s1259_s11 = smov 0   ;;  %s1261_s12 = smov 0  }
  0x13   :  { %s1263_s13 = smov 0   ;;  %s1265_s14 = smov 0  }
  0x14 LB: > { %1620 = sst [smem:[#allocation14_spill]] %s1170_s10  ;;  %s33_s15 = sadd.s32 1, %s1178_s12  ;;  %s1186_s14 = sphi %s1265_s14, %s24_s14   ;;  %s1182_s13 = sphi %s1263_s13, %s1658_s13   ;;  %s1178_s12 = sphi %s1261_s12, %s1657_s12   ;;  %s1174_s11 = sphi %s1259_s11, %s1656_s11   ;;  %s1170_s10 = sphi %s1257_s10, %s1669_s10   ;;  %s1166_s9 = sphi %s1255_s9, %s1668_s9   ;;  %s1162_s8 = sphi %s1253_s8, %s1667_s8   ;;  %s1158_s30 = sphi %s1251_s30, %s1666_s30   ;;  %s1154_s29 = sphi %s1249_s29, %s1665_s29   ;;  %s1150_s28 = sphi %s1247_s28, %s1664_s28   ;;  %s1146_s27 = sphi %s1245_s27, %s1663_s27   ;;  %s1142_s26 = sphi %s1243_s26, %s1662_s26   ;;  %s1138_s25 = sphi %s1241_s25, %s1661_s25   ;;  %s1134_s24 = sphi %s1239_s24, %s1660_s24  }
  0x15   : > { %1621 = sst [smem:[#allocation15_spill]] %s1174_s11  ;;  %s36_s16 = sadd.s32 1, %s1182_s13 }
  0x16   : > { %1622 = sst [smem:[#allocation16_spill]] %s1178_s12  ;;  %p34_p0 = scmp.ge.s32.totalorder %s33_s15, 3 }
  0x17   : > { %1623 = sst [smem:[#allocation17_spill]] %s1182_s13  ;;  %s43_s17 = sadd.s32 1, %s1166_s9 }
  0x18   : > { %p50_p1 = scmp.ne.s32.totalorder %s1166_s9, %s1162_s8  ;;  %p51_p2 = scmp.eq.s32.totalorder %s1186_s14, 0 }
  0x19   : > { %s1671_s15 = smov (%p34_p0, %s33_s15), 0  ;;  %s1673_s16 = smov (!%p34_p0, %s36_s16), %s1182_s13 }
  0x1a   : > { %1624 = sst [smem:[#allocation18_spill]] %s1671_s15  ;;  %p1320_p3 = por %p51_p2, %p50_p1 }
  0x1b   : > { %p56_p4 = scmp.ne.s32.totalorder %s1162_s8, %s1158_s30  ;;  %p38_p5 = scmp.ge.s32.totalorder %s1673_s16, 3 }
  0x1c   : > { %s150_s19 = ssub.s32 %s1178_s12, %s1671_s15  ;;  %s153_s20 = sadd.s32 1, %s1154_s29 }
  0x1d   : > { %p151_p6 = scmp.eq.s32.totalorder %s150_s19, 0  ;;  %s1675_s16 = smov (%p38_p5, %s1673_s16), 0 }
  0x1e   : > { %1626 = sst [smem:[#allocation19_spill]] %s1675_s16  ;;  %s40_s22 = ssub.s32 %s1182_s13, %s1675_s16 }
  0x1f   : > { %s1332_s21 = scalar_select %p151_p6, %s1154_s29, %s153_s20  }
  0x20   : > { %p160_p7 = scmp.ne.s32.totalorder %s1154_s29, %s1150_s28  ;;  %p41_p8 = scmp.eq.s32.totalorder %s40_s22, 0 }
  0x21   : > { %1627 = sst [smem:[#allocation20_spill]] %s1332_s21  ;;  %p166_p9 = scmp.ne.s32.totalorder %s1150_s28, %s1146_s27 }
  0x22   : > { %p1342_p10 = por %p160_p7, %p51_p2  ;;  %s204_s15 = sor.u32 %s150_s19, %s40_s22 }
  0x23   : > { %s1347_s7 = scalar_select %p41_p8, %s1166_s9, %s43_s17  }
  0x24   : > { %p205_p11 = scmp.eq.s32.totalorder %s204_s15, 0  ;;  %s207_s11 = sadd.s32 1, %s1142_s26 }
  0x25   : > { %p817_p12 = scmp.lt.s32.totalorder %s1186_s14, 9  ;;  %s266_s20 = sand.u32 1, %s1186_s14  }
  0x26   : > { %s1352_s4 = scalar_select %p205_p11, %s1142_s26, %s207_s11  }
  0x27   : > { %s268_s16 = sand.u32 1, %s1166_s9   ;;  %s729_s3 = sshll.u32 %s1182_s13, 6 }
  0x28   : > { %s728_s21 = sshll.u32 %s268_s16, 2  ;;  %s1629_s0 = sld [smem:[#allocation21_spill]] }
  0x29   : > { %s270_s1 = scalar_lea.vmem [#allocation3], %s728_s21  ;;  %p1362_p13 = pnand %p817_p12, %p1320_p3 }
  0x2a   : > { %s277_s5 = sshll.u32 %s270_s1, 4  ;;  %p1368_p0 = pnand %p817_p12, %p1342_p10  ;;  %s278_s5 = int_to_ptr.vmem [resolvable:$true] %s277_s5 }
  0x2b   : > { %s1372_s15 = scalar_lea.sflag [#allocation4], %s266_s20  ;;  %p954_p1 = pneg %p1362_p13 }
  0x2c   : > { %s965_s2 = scalar_lea.vmem %s278_s5, 64  ;;  %s1188_s1 = smov [#allocation3]  }
  0x2d   : > { %p966_p2 = scmp.ne.s32.totalorder %s278_s5, %s965_s2 }
  0x2e   : > { %s275_s10 = scalar_lea.hbm %s1629_s0, %s729_s3  ;;  %s970_s3 = sshll.u32 %s1188_s1, 4  ;;  %s971_s3 = int_to_ptr.vmem [resolvable:$false] %s970_s3 }
  0x2f   : > { %p968_p5 = pnand %p966_p2, %p954_p1  ;;  %s972_s6 = scalar_lea.vmem %s971_s3, 128 }
  0x30   : > { %p973_p3 = scmp.lt.s32.totalorder %s278_s5, %s971_s3  ;;  %p974_p7 = scmp.lt.s32.totalorder %s972_s6, %s965_s2 }
  0x31   : > { %p969_p6 = pneg %p968_p5 }
  0x32   : > { %p975_p8 = por %p974_p7, %p973_p3 }
  0x34   : > { %p976_p11 = pnand %p975_p8, %p969_p6 }
  0x36   : > { %979 = shalt.err (!%p976_p11)
}
  0x37   : > { %808 = dma.hbm_to_vmem [thread:$0]  (!%p1362_p13), %s275_s10, 64, %s278_s5, %s1372_s15  }
  0x38   : > { %s1380_s16 = sadd.s32 4294967295, %s1186_s14   ;;  %s724_s18 = sadd.s32 4294967294, %s1186_s14  }
  0x39   : > { %p1609_p10 = scmp.eq.s32.totalorder %s1380_s16, 0  ;;  %p217_p12 = scmp.ne.s32.totalorder %s1142_s26, %s1138_s25 }
  0x3a   : > { %p218_p1 = scmp.eq.s32.totalorder %s1380_s16, 8  ;;  %p223_p6 = scmp.ne.s32.totalorder %s1138_s25, %s1134_s24 }
  0x3b   : > { %p1392_p2 = por %p1609_p10, %p56_p4  ;;  %p1401_p13 = por %p166_p9, %p1609_p10 }
  0x3c   : > { %p1405_p5 = por %p218_p1, %p217_p12  ;;  %p224_p3 = scmp.eq.s32.totalorder %s724_s18, 8 }
  0x3d   : > { %p725_p7 = scmp.ge.s32.totalorder %s1186_s14, 1  ;;  %p231_p8 = scmp.lt.s32.totalorder %s1186_s14, 10 }
  0x3e   : > { %s1634_s10 = scalar_select %p1405_p5, 1, 0 }
  0x3f   : > { %p1413_p11 = por %p224_p3, %p223_p6  ;;  %p1417_p4 = pnand %p725_p7, %p231_p8 }
  0x40   : > { %s1189_s27 = smov [#allocation6]   ;;  %s286_s23 = sand.u32 1, %s1154_s29  }
  0x41   : > { %s1635_s30 = scalar_select %p1413_p11, 1, 0 }
  0x42   : > { %s243_s22 = sshll.u32 %s1189_s27, 4  ;;  %p801_p9 = pneg %p1417_p4  ;;  %s244_s22 = int_to_ptr.vmem [resolvable:$true] %s243_s22 }
  0x43   : > { %s731_s20 = sshll.u32 %s1178_s12, 6  ;;  %s730_s2 = sshll.u32 %s286_s23, 5 }
  0x44   : > { %p1427_p12 = pnand %p801_p9, %p1609_p10  ;;  %s1638_s6 = sld [smem:[#allocation26_spill]] }
  0x45   : > { %s288_s0 = scalar_lea.vmem [#allocation8], %s730_s2  ;;  %s991_s27 = scalar_lea.vmem %s244_s22, 512 }
  0x46   : > { %s294_s13 = sshll.u32 %s288_s0, 4  ;;  %p982_p1 = pneg %p1427_p12  ;;  %s295_s13 = int_to_ptr.vmem [resolvable:$true] %s294_s13 }
  0x47   : > { %p992_p6 = scmp.ne.s32.totalorder %s244_s22, %s991_s27  ;;  %p999_p8 = scmp.lt.s32.totalorder %s244_s22, %s244_s22 }
  0x48   : > { %p1000_p9 = scmp.lt.s32.totalorder %s991_s27, %s991_s27 }
  0x49   : > { %p994_p3 = pnand %p992_p6, %p982_p1 }
  0x4a   : > { %s1434_s18 = scalar_lea.hbm %s1638_s6, %s731_s20  ;;  %p1001_p10 = por %p1000_p9, %p999_p8 }
  0x4b   : > { %p995_p7 = pneg %p994_p3 }
  0x4d   : > { %p1002_p11 = pnand %p1001_p10, %p995_p7 }
  0x4f   : > { %1005 = shalt.err (!%p1002_p11)
}
  0x50   : > { %s1190_s12 = smov 64   ;;  %s1191_s23 = smov 4  }
  0x51   : > { %s1639_s2 = sld [smem:[#allocation22_spill]]  ;;  %p1008_p5 = pneg %p1368_p0 }
  0x52   : > { %s1019_s0 = scalar_lea.vmem %s295_s13, 512  ;;  %s1192_s3 = smov [#allocation8]  }
  0x53   : > { %p1020_p1 = scmp.ne.s32.totalorder %s295_s13, %s1019_s0  ;;  %s1024_s6 = sshll.u32 %s1192_s3, 4  ;;  %s1025_s6 = int_to_ptr.vmem [resolvable:$false] %s1024_s6 }
  0x54   : > { %s1026_s27 = scalar_lea.vmem %s1025_s6, 1024  ;;  %p1027_p10 = scmp.lt.s32.totalorder %s295_s13, %s1025_s6 }
  0x55   : > { %p1022_p6 = pnand %p1020_p1, %p1008_p5  ;;  %p1028_p11 = scmp.lt.s32.totalorder %s1026_s27, %s1019_s0 }
  0x57   : > { %804 = dma.hbm_to_vmem [thread:$0]  (!%p1427_p12), %s1639_s2, 512, %s244_s22, [#allocation7], %s1190_s12, %s1190_s12, %s1191_s23  }
  0x58   : > { %p1023_p3 = pneg %p1022_p6  ;;  %p1029_p7 = por %p1028_p11, %p1027_p10 }
  0x5a   : > { %p1030_p8 = pnand %p1029_p7, %p1023_p3 }
  0x5c   : > { %1033 = shalt.err (!%p1030_p8)
}
  0x5d   : > { %s1193_s17 = smov 192   ;;  %312 = sbr.rel (%p1417_p4) target bundleno = 889 (0x379), region = 48 }
  0x5e   : > { %811 = dma.hbm_to_vmem [thread:$0]  (!%p1368_p0), %s1434_s18, 512, %s295_s13, %s1372_s15, %s1193_s17, %s1190_s12, %s1191_s23  }
  0x5f   : > { %s314_s22 = sand.u32 (!%p1417_p4), 1, %s1380_s16   ;;  %s316_s20 = sand.u32 (!%p1417_p4), 1, %s1162_s8  }
  0x60   : > { %s1453_s1 = sshll.u32 (!%p1417_p4), %s316_s20, 2  ;;  %s315_s2 = scalar_lea.sflag (!%p1417_p4), [#allocation4], %s314_s22 }
  0x61   : > { %s318_s0 = scalar_lea.vmem (!%p1417_p4), [#allocation3], %s1453_s1 }
  0x62   : > { %1117 = dma.done.wait (%p1392_p2), %s315_s2, 64  }
  0x63   : > { %1119 = vsyncadd (%p1392_p2), %s315_s2, 4294967232  ;;  %p1640_p0 = scmp.eq.s32.totalorder %s1380_s16, 0 }
  0x65   : > { %1121 = dma.done.wait (%p1640_p0), [#allocation7], 512   ;;  %p1641_p5 = pmov %p1640_p0 }
  0x66   : > { %s329_s12 = sand.u32 1, %s1150_s28  }
  0x67   : > { %1123 = vsyncadd (%p1641_p5), [#allocation7], 4294966784  ;;  %s735_s13 = sshll.u32 %s329_s12, 5 }
  0x68   : > { %s1465_s11 = scalar_lea.vmem [#allocation8], %s735_s13 }
  0x69   : > { %1125 = dma.done.wait (%p1401_p13), %s315_s2, 512  }
  0x6a   : > { %1127 = vsyncadd (%p1401_p13), %s315_s2, 4294966784  ;;  %s1642_s15 = sld [smem:[#allocation14_spill]]  ;;  %s367_s19 = sand.u32 1, %s1138_s25  }
  0x6b   : > { %s1475_s16 = sshll.u32 %s367_s19, 3  ;;  %s1643_s3 = sld [smem:[#allocation27_spill]] }
  0x6c   : > { %s369_s27 = scalar_lea.vmem [#allocation9], %s1475_s16 }
  0x70   : > { %p370_p2 = scmp.lt.s32.totalorder %s1642_s15, 2  ;;  %p737_p13 = scmp.ne.s32.totalorder %s1642_s15, 0 }
  0x71   : > { %s1644_s22 = sld [smem:[#allocation23_spill]] (!%p737_p13) }
  0x72   : > { %s1478_s21 = scalar_select %p370_p2, %s1642_s15, 2 }
  0x73   : > { %377 = sbr.rel (%p737_p13) target bundleno = 663 (0x297), region = 64  ;;  %s1645_s2 = sld [smem:[#allocation24_spill]] (!%p737_p13) }
  0x74   : > { %s372_s6 = scalar_lea.vmem %s1643_s3, %s1478_s21  ;;  %s1646_s13 = sld [smem:[#allocation25_spill]] (!%p737_p13) }
  0x78   : > { %v940_v0 = vld [vmem:[#allocation6 + $0x18] sm:$0xff]   ;;  %v1194_v1 = vmov 0.0   ;;  %v941_v2 = vld [vmem:[#allocation6 + $0x10] sm:$0xff]   ;;  %vm1195_vm0 = vmmov 0   ;;  %v942_v3 = vld [vmem:[#allocation6 + $0x8] sm:$0xff]   ;;  %vm418_vm1 = vcmask 523264  }
  0x79   : > { %766 = vmatprep.subr.bf16.mxu0 %v1194_v1  ;;  %774 = vmatprep.mubr.msk.bf16.mxu0 %vm1195_vm0, %v1194_v1  ;;  %v943_v4 = vld [vmem:[#allocation6] sm:$0xff]   ;;  %v378_v5 = vld [vmem:[%s318_s0] sm:$0xf]  ;;  %v738_v6 = vld [vmem:[%s1644_s22] ss:$0 sm:$0xff]  ;;  %vm498_vm2 = vcmask 519168  }
  0x7a   : > { %767 = vmatpush3.bf16.msra.mxu0 %v940_v0  ;;  %v744_v27 = vld [vmem:[%s1645_s2] ss:$0 sm:$0xff] }
  0x7b   : > { %768 = vmatprep.subr.bf16.mxu0 %v1194_v1  ;;  %v745_v29 = vld [vmem:[%s1646_s13] ss:$0 sm:$0xff] }
  0x7e   : > { %769 = vmatpush3.bf16.msra.mxu0 %v941_v2 }
  0x7f   : > { %770 = vmatprep.subr.bf16.mxu0 %v1194_v1 }
  0x82   : > { %771 = vmatpush3.bf16.msra.mxu0 %v942_v3 }
  0x83   : > { %772 = vmatprep.subr.bf16.mxu0 %v1194_v1 }
  0x86   : > { %773 = vmatpush3.bf16.msra.mxu0 %v943_v4 }
  0x89   : > { %775 = vmatmul.mubr.msk.bf16.vlgmr.msra.gmra.mxu0 %vm418_vm1, %v378_v5 }
 0x149   : > { %v456_v7 = vpop.f32.mrf.mxu0 }
 0x14a   : > { %v457_v8 = vadd.f32 %v738_v6, %v456_v7 }
 0x14b   : > { %v776_v9 = vpop.f32.mrf.mxu0 }
 0x14c   : > { %v463_v10 = vmul.f32 0.70710677, %v457_v8  ;;  %v462_v14 = vmul.f32 0.5, %v457_v8 }
 0x14d   : > { %v459_v11 = vpop.f32.mrf.mxu0 }
 0x14e   : > { %944 = verf.f32 %v463_v10 }
 0x14f   : > { %v777_v12 = vpop.f32.mrf.mxu0 }
 0x15b   : > { %v945_v13 = vpop.eup %944 }
 0x15c   : > { %v465_v15 = vadd.f32 1.0, %v945_v13 }
 0x15e   : > { %v466_v16 = vmul.f32 %v465_v15, %v462_v14 }
 0x160   : > { %v467_v17 = vsel %vm418_vm1, %v466_v16, 0.0 }
 0x161   : > { %468 = vadd.xlane.f32.xlu0 %v467_v17 }
 0x1ea   : > { %v469_v18 = vpop.xlane.xlu0 %468 }
 0x1eb   : > { %v471_v19 = vmul.f32 0.015625, %v469_v18 }
 0x1ed   : > { %v472_v20 = vsub.f32 %v466_v16, %v471_v19 }
 0x1ef   : > { %v473_v21 = vmul.f32 %v472_v20, %v472_v20 }
 0x1f1   : > { %v474_v22 = vsel %vm418_vm1, %v473_v21, 0.0 }
 0x1f2   : > { %475 = vadd.xlane.f32.xlu0 %v474_v22 }
 0x27b   : > { %v476_v23 = vpop.xlane.xlu0 %475 }
 0x27c   : > { %v477_v24 = vmul.f32 0.015625, %v476_v23 }
 0x27e   : > { %v478_v25 = vadd.f32 1e-12, %v477_v24 }
 0x280   : > { %946 = vrsqrt.f32 %v478_v25 }
 0x28d   : > { %v947_v26 = vpop.eup %946 }
 0x28e   : > { %v480_v28 = vmul.f32 %v947_v26, %v472_v20 }
 0x290   : > { %v488_v30 = vmul.f32 %v744_v27, %v480_v28 }
 0x292   : > { %v496_v31 = vadd.f32 %v745_v29, %v488_v30 }
 0x294   : > { %v497_v32 = vpack.c.bf16 %v496_v31, %v496_v31 }
 0x296   : > { %499 = vst.msk [vmem:[#allocation2] sm:$0xf] %vm498_vm2, %v497_v32 }
 0x297 PF: > { %v948_v33 = vld [vmem:[%s1465_s11 + $0x18] sm:$0xff]   ;;  %v1196_v34 = vmov 0.0   ;;  %s1647_s15 = sld [smem:[#allocation15_spill]]  ;;  %v949_v35 = vld [vmem:[%s1465_s11 + $0x10] sm:$0xff]   ;;  %vm1197_vm3 = vmmov 0   ;;  %v950_v36 = vld [vmem:[%s1465_s11 + $0x8] sm:$0xff]  }
 0x298   : > { %778 = vmatprep.subr.bf16.mxu0 %v1196_v34  ;;  %s1648_s18 = sld [smem:[#allocation14_spill]]  ;;  %786 = vmatprep.mubr.msk.bf16.mxu0 %vm1197_vm3, %v1196_v34  ;;  %v951_v37 = vld [vmem:[%s1465_s11] sm:$0xff]   ;;  %vm540_vm4 = vcmask 523264   ;;  %v746_v39 = vld [vmem:[%s372_s6] ss:$0 sm:$0xff]  ;;  %s601_s1 = sshll.u32 %s369_s27, 4  ;;  %s1518_s1 = int_to_ptr.vmem [resolvable:$true] %s601_s1 }
 0x299   : > { %779 = vmatpush3.bf16.msra.mxu0 %v948_v33  ;;  %s1650_s0 = sld [smem:[#allocation28_spill]]  ;;  %s586_s21 = scalar_lea.sflag [#allocation5], %s367_s19 }
 0x29a   : > { %780 = vmatprep.subr.bf16.mxu0 %v1196_v34  ;;  %s1034_s6 = scalar_lea.vmem %s1518_s1, 128  ;;  %p1651_p12 = scmp.ne.s32.totalorder %s1634_s10, 0 }
 0x29b   : > { %p1035_p4 = scmp.ne.s32.totalorder %s1518_s1, %s1034_s6  ;;  %s1198_s13 = smov [#allocation9]  }
 0x29d   : > { %781 = vmatpush3.bf16.msra.mxu0 %v949_v35  ;;  %v500_v38 = vld [vmem:[#allocation2] sm:$0xf]  ;;  %s790_s23 = smul.u32 3, %s1647_s15  ;;  %p1036_p9 = pnand %p1035_p4, %p1651_p12 }
 0x29e   : > { %782 = vmatprep.subr.bf16.mxu0 %v1196_v34  ;;  %s1038_s15 = sshll.u32 %s1198_s13, 4  ;;  %s1039_s15 = int_to_ptr.vmem [resolvable:$false] %s1038_s15 }
 0x29f   : > { %s597_s3 = sadd.s32 %s1648_s18, %s790_s23  ;;  %p1037_p1 = pneg %p1036_p9 }
 0x2a0   : > { %s753_s20 = sshll.u32 %s597_s3, 7  ;;  %s1040_s18 = scalar_lea.vmem %s1039_s15, 256 }
 0x2a1   : > { %783 = vmatpush3.bf16.msra.mxu0 %v950_v36  ;;  %s1516_s12 = scalar_lea.hbm %s1650_s0, %s753_s20  ;;  %p1041_p6 = scmp.lt.s32.totalorder %s1518_s1, %s1039_s15 }
 0x2a2   : > { %784 = vmatprep.subr.bf16.mxu0 %v1196_v34  ;;  %p1042_p3 = scmp.lt.s32.totalorder %s1040_s18, %s1034_s6 }
 0x2a4   : > { %p1043_p10 = por %p1042_p3, %p1041_p6 }
 0x2a5   : > { %785 = vmatpush3.bf16.msra.mxu0 %v951_v37 }
 0x2a6   : > { %p1044_p11 = pnand %p1043_p10, %p1037_p1 }
 0x2a8   : > { %787 = vmatmul.mubr.msk.bf16.vlgmr.msra.gmra.mxu0 %vm540_vm4, %v500_v38 }
 0x368   : > { %v578_v40 = vpop.f32.mrf.mxu0 }
 0x369   : > { %v579_v41 = vadd.f32 %v746_v39, %v578_v40 }
 0x36a   : > { %v788_v42 = vpop.f32.mrf.mxu0 }
 0x36b   : > { %584 = vst [vmem:[%s369_s27] sm:$0xff] %v579_v41 }
 0x36c   : > { %v581_v43 = vpop.f32.mrf.mxu0 }
 0x36d   : > { %1047 = shalt.err (!%p1044_p11)
}
 0x36e   : > { %s1048_s16 = scalar_lea.hbm %s1516_s12, 128  ;;  %s1052_s23 = scalar_lea.hbm %s1650_s0, 1152 }
 0x36f   : > { %p1049_p7 = scmp.ne.s32.totalorder %s1516_s12, %s1048_s16  ;;  %p1053_p5 = scmp.lt.s32.totalorder %s1516_s12, %s1650_s0 }
 0x370   : > { %p1054_p2 = scmp.lt.s32.totalorder %s1052_s23, %s1048_s16 }
 0x371   : > { %p1050_p8 = pnand %p1049_p7, %p1651_p12 }
 0x372   : > { %p1055_p13 = por %p1054_p2, %p1053_p5 }
 0x373   : > { %p1051_p0 = pneg %p1050_p8 }
 0x375   : > { %p1056_p4 = pnand %p1055_p13, %p1051_p0 }
 0x377   : > { %1059 = shalt.err (!%p1056_p4)
}
 0x378   : > { %799 = dma.vmem_to_hbm [thread:$0]  (%p1651_p12), %s1518_s1, 128, %s1516_s12, %s586_s21   ;;  %v789_v44 = vpop.f32.mrf.mxu0 }
 0x379 PF: > { %p819_p9 = scmp.ge.s32.totalorder %s1186_s14, 2  ;;  %s613_s17 = sand.u32 1, %s1134_s24  }
 0x37a   : > { %p1652_p1 = scmp.ne.s32.totalorder %s1635_s30, 0  ;;  %s614_s22 = scalar_lea.sflag [#allocation5], %s613_s17 }
 0x37c   : > { %p813_p6 = pnand %p819_p9, %p1652_p1 }
 0x37e   : > { %p814_p3 = pneg %p813_p6 }
 0x380   : > { %1129 = dma.done.wait (%p814_p3), %s614_s22, 128  }
 0x381   : > { %1131 = vsyncadd (%p814_p3), %s614_s22, 4294967168  ;;  %s24_s14 = sadd.s32 1, %s1186_s14   ;;  %s1654_s20 = sld [smem:[#allocation20_spill]] }
 0x382   : > { %p1549_p10 = scmp.ge.s32.totalorder %s24_s14, 11   ;;  %s1655_s1 = sld [smem:[#allocation16_spill]] }
 0x383   : > { %s1656_s11 = sld [smem:[#allocation17_spill]]  ;;  %s1660_s24 = smov %s1138_s25 }
 0x384   : > { %s1657_s12 = sld [smem:[#allocation18_spill]]  ;;  %s1661_s25 = smov %s1142_s26 }
 0x385   : > { %s1658_s13 = sld [smem:[#allocation19_spill]]  ;;  %s1662_s26 = smov %s1352_s4 }
 0x386   : > { %s1663_s27 = smov %s1150_s28  ;;  %s1664_s28 = smov %s1154_s29 }
 0x387   : > { %s1665_s29 = smov %s1654_s20  ;;  %s1666_s30 = smov %s1162_s8 }
 0x388   : > { %s1667_s8 = smov %s1166_s9  ;;  %s1668_s9 = smov %s1347_s7 }
 0x389   : > { %s1669_s10 = smov %s1655_s1  ;;  %23 = sbr.rel (!%p1549_p10) target bundleno = 20 (0x14), region = 115 }
 0x38e   :  { %619 = vsyncpa [#allocation4], 1 }
 0x38f   :  { %621 = vsyncpa [#allocation4 + $0x1], 1 }
 0x390   :  { %622 = vsyncpa [#allocation7], 1 }
 0x391   :  { %623 = vsyncpa [#allocation5], 1 }
 0x392   :  { %625 = vsyncpa [#allocation5 + $0x1], 1 }

</bundles_post_ra>
